<compile_context>
chip_gen: v5e
topology: v5e:2x2
jax: 0.10.0
libtpu: 0.0.40
codegen_flags: <defaults>
</compile_context>

<pallas_src>
import math

import jax
import jax.numpy as jnp
from jax.experimental import pallas as pl
from jax.experimental.pallas import tpu as pltpu

OBS_DIM = 3                  # Pendulum-v1 observation space
ACT_DIM = 1                  # Pendulum-v1 action space
IN_DIM = OBS_DIM + ACT_DIM   # critic input = cat(obs, act)
HIDDEN = 256
HEAD_PAD = 8                 # head padded to 8 output lanes only (masked store, DMA-cheap)
MAX_BLOCK_B = 2048           # cap on rows per batch tile (keeps h1/h2 intermediates modest)


def _round_up(x, m):
    return (x + m - 1) // m * m


def _cdiv(a, b):
    return -(-a // b)


def _num_tensorcores():
    """One batch tile per TensorCore: 2 on v7x (megacore sharding), 1 on v5e/v6e."""
    try:
        kind = jax.devices()[0].device_kind.lower()
    except Exception:
        return 1
    return 2 if "v7" in kind else 1


def critic_kernel(obs_ref, act_ref, w1_ref, b1_ref, w2_ref, b2_ref, w3_ref, b3_ref, out_ref):
    obs = obs_ref[...]                # (bb, OBS_DIM) f32
    act = act_ref[...]                # (bb, ACT_DIM) f32
    w1 = w1_ref[...]                  # (IN_DIM, HIDDEN) f32

    # Layer 1 (K = 4): broadcast FMAs on the VPU, built directly from the two input
    # refs (the concatenated x is never materialised anywhere).
    h1 = b1_ref[...] + obs[:, 0:1] * w1[0:1, :]
    for k in range(1, OBS_DIM):       # static Python loop, unrolls
        h1 = h1 + obs[:, k:k + 1] * w1[k:k + 1, :]
    for k in range(ACT_DIM):
        h1 = h1 + act[:, k:k + 1] * w1[OBS_DIM + k:OBS_DIM + k + 1, :]
    h1 = jnp.maximum(h1, 0.0)

    # Layer 2: 256x256 bf16 MXU matmul, f32 accumulation.
    h2 = jnp.dot(h1.astype(jnp.bfloat16), w2_ref[...],
                 preferred_element_type=jnp.float32) + b2_ref[...]
    h2 = jnp.maximum(h2, 0.0)

    # Head: 256 -> HEAD_PAD (zero-padded from 1 output column; bias folded into b3_ref).
    q = jnp.dot(h2.astype(jnp.bfloat16), w3_ref[...],
                preferred_element_type=jnp.float32) + b3_ref[...]
    out_ref[...] = q                  # (bb, 8); column 0 is the Q-value


def critic_forward(obs, act, packed_params, *, num_tiles=None, max_block_b=MAX_BLOCK_B):
    """Critic forward pass as a single Pallas kernel: one batch tile per TensorCore."""
    w1, b1, w2, b2, w3p, b3p = packed_params
    if obs.dtype != jnp.float32:
        obs = obs.astype(jnp.float32)
    if act.dtype != jnp.float32:
        act = act.astype(jnp.float32)

    B = obs.shape[0]
    ntc = _num_tensorcores() if num_tiles is None else max(1, int(num_tiles))
    bb = min(max_block_b, _round_up(_cdiv(B, ntc), 8))   # rows per tile (multiple of 8)
    ntiles = _cdiv(B, bb)
    Bp = bb * ntiles
    if Bp != B:                                          # pad only when unavoidable
        obs = jnp.pad(obs, ((0, Bp - B), (0, 0)))
        act = jnp.pad(act, ((0, Bp - B), (0, 0)))

    flops = 2 * Bp * (IN_DIM * HIDDEN + HIDDEN * HIDDEN + HIDDEN * HEAD_PAD)
    bytes_accessed = (obs.size * 4 + act.size * 4 + w1.size * 4 + b1.size * 4
                      + w2.size * 2 + b2.size * 4 + w3p.size * 2 + b3p.size * 4
                      + Bp * HEAD_PAD * 4)

    out = pl.pallas_call(
        critic_kernel,
        out_shape=jax.ShapeDtypeStruct((Bp, HEAD_PAD), jnp.float32),
        grid=(ntiles,),
        in_specs=[
            pl.BlockSpec((bb, OBS_DIM), lambda i: (i, 0)),       # obs tile
            pl.BlockSpec((bb, ACT_DIM), lambda i: (i, 0)),       # act tile
            pl.BlockSpec((IN_DIM, HIDDEN), lambda i: (0, 0)),    # W1 (f32, resident)
            pl.BlockSpec((1, HIDDEN), lambda i: (0, 0)),         # b1
            pl.BlockSpec((HIDDEN, HIDDEN), lambda i: (0, 0)),    # W2 (bf16, resident)
            pl.BlockSpec((1, HIDDEN), lambda i: (0, 0)),         # b2
            pl.BlockSpec((HIDDEN, HEAD_PAD), lambda i: (0, 0)),  # W3 padded (bf16)
            pl.BlockSpec((1, HEAD_PAD), lambda i: (0, 0)),       # b3 padded
        ],
        out_specs=pl.BlockSpec((bb, HEAD_PAD), lambda i: (i, 0)),
        compiler_params=pltpu.CompilerParams(dimension_semantics=("parallel",)),
        cost_estimate=pl.CostEstimate(flops=flops, transcendentals=0,
                                      bytes_accessed=bytes_accessed),
    )(obs, act, w1, b1, w2, b2, w3p, b3p)

    return out[:B, 0:1]                                  # (B, 1) Q-values


def init_params(key):
    """PyTorch nn.Linear-style init (U(+/- 1/sqrt(fan_in))); weights stored as (in, out)."""
    def linear(k, fan_in, fan_out):
        kw, kb = jax.random.split(k)
        bound = 1.0 / math.sqrt(fan_in)
        w = jax.random.uniform(kw, (fan_in, fan_out), jnp.float32, -bound, bound)
        b = jax.random.uniform(kb, (1, fan_out), jnp.float32, -bound, bound)
        return w, b

    k1, k2, k3 = jax.random.split(key, 3)
    w1, b1 = linear(k1, IN_DIM, HIDDEN)
    w2, b2 = linear(k2, HIDDEN, HIDDEN)
    w3, b3 = linear(k3, HIDDEN, 1)
    return (w1, b1, w2, b2, w3, b3)


def pack_params(params):
    """Pack params for the kernel: bf16 MXU weights, head zero-padded to 8 output lanes."""
    w1, b1, w2, b2, w3, b3 = params
    w3p = jnp.zeros((HIDDEN, HEAD_PAD), jnp.float32).at[:, 0:1].set(w3)
    b3p = jnp.zeros((1, HEAD_PAD), jnp.float32).at[:, 0:1].set(b3)
    return (w1, b1, w2.astype(jnp.bfloat16), b2, w3p.astype(jnp.bfloat16), b3p)


def critic_forward_ref(obs, act, params):
    """Pure-JAX f32 reference (matches the PyTorch Critic semantics)."""
    w1, b1, w2, b2, w3, b3 = params
    x = jnp.concatenate([obs, act], axis=-1)
    h1 = jnp.maximum(x @ w1 + b1, 0.0)
    h2 = jnp.maximum(h1 @ w2 + b2, 0.0)
    return h2 @ w3 + b3


if __name__ == "__main__":
    key = jax.random.PRNGKey(0)
    k_obs, k_act, k_params = jax.random.split(key, 3)

    batch = 8
    obs = jax.random.normal(k_obs, (batch, OBS_DIM), jnp.float32)
    act = jax.random.uniform(k_act, (batch, ACT_DIM), jnp.float32, -2.0, 2.0)

    params = init_params(k_params)
    packed = pack_params(params)

    q = critic_forward(obs, act, packed)
    jax.block_until_ready(q)

    q_ref = critic_forward_ref(obs, act, params)
    assert q.shape == (batch, ACT_DIM)
    # bf16 MXU operands with f32 accumulation -> relaxed tolerance vs. the f32 reference.
    assert jnp.allclose(q, q_ref, atol=2e-2, rtol=2e-2), (q, q_ref)

    print("KERNEL_OK")
</pallas_src>

<mosaic_0001>
module attributes {stable_mosaic.version = 11 : i64} {
  func.func @critic_kernel(%arg0: i32, %arg1: memref<8x3xf32, #tpu.memory_space<vmem>>, %arg2: memref<8x1xf32, #tpu.memory_space<vmem>>, %arg3: memref<4x256xf32, #tpu.memory_space<vmem>>, %arg4: memref<1x256xf32, #tpu.memory_space<vmem>>, %arg5: memref<256x256xbf16, #tpu.memory_space<vmem>>, %arg6: memref<1x256xf32, #tpu.memory_space<vmem>>, %arg7: memref<256x8xbf16, #tpu.memory_space<vmem>>, %arg8: memref<1x8xf32, #tpu.memory_space<vmem>>, %arg9: memref<8x8xf32, #tpu.memory_space<vmem>>) attributes {dimension_semantics = [#tpu.dimension_semantics<parallel>], iteration_bounds = array<i64: 1>, scalar_prefetch = 0 : i64, scratch_operands = 0 : i64, tpu.core_type = #tpu.core_type<tc>, window_params = [{transform_indices = @transform_0, window_bounds = array<i64: 8, 3>}, {transform_indices = @transform_1, window_bounds = array<i64: 8, 1>}, {pipeline_mode = #tpu.pipeline_mode<synchronous>, transform_indices = @transform_2, window_bounds = array<i64: 4, 256>}, {pipeline_mode = #tpu.pipeline_mode<synchronous>, transform_indices = @transform_3, window_bounds = array<i64: 1, 256>}, {pipeline_mode = #tpu.pipeline_mode<synchronous>, transform_indices = @transform_4, window_bounds = array<i64: 256, 256>}, {pipeline_mode = #tpu.pipeline_mode<synchronous>, transform_indices = @transform_5, window_bounds = array<i64: 1, 256>}, {pipeline_mode = #tpu.pipeline_mode<synchronous>, transform_indices = @transform_6, window_bounds = array<i64: 256, 8>}, {pipeline_mode = #tpu.pipeline_mode<synchronous>, transform_indices = @transform_7, window_bounds = array<i64: 1, 8>}, {transform_indices = @transform_8, window_bounds = array<i64: 8, 8>}]} {
    %c0 = arith.constant 0 : index
    %c0_0 = arith.constant 0 : index
    %0 = vector.load %arg1[%c0, %c0_0] : memref<8x3xf32, #tpu.memory_space<vmem>>, vector<8x3xf32>
    %c0_1 = arith.constant 0 : index
    %c0_2 = arith.constant 0 : index
    %1 = vector.load %arg2[%c0_1, %c0_2] : memref<8x1xf32, #tpu.memory_space<vmem>>, vector<8x1xf32>
    %c0_3 = arith.constant 0 : index
    %c0_4 = arith.constant 0 : index
    %2 = vector.load %arg3[%c0_3, %c0_4] : memref<4x256xf32, #tpu.memory_space<vmem>>, vector<4x256xf32>
    %c0_5 = arith.constant 0 : index
    %c0_6 = arith.constant 0 : index
    %3 = vector.load %arg4[%c0_5, %c0_6] : memref<1x256xf32, #tpu.memory_space<vmem>>, vector<1x256xf32>
    %4 = vector.extract_strided_slice %0 {offsets = [0, 0], sizes = [8, 1], strides = [1, 1]} : vector<8x3xf32> to vector<8x1xf32>
    %5 = vector.extract_strided_slice %2 {offsets = [0, 0], sizes = [1, 256], strides = [1, 1]} : vector<4x256xf32> to vector<1x256xf32>
    %6 = vector.broadcast %4 : vector<8x1xf32> to vector<8x256xf32>
    %7 = vector.broadcast %5 : vector<1x256xf32> to vector<8x256xf32>
    %8 = arith.mulf %6, %7 : vector<8x256xf32>
    %9 = vector.broadcast %3 : vector<1x256xf32> to vector<8x256xf32>
    %10 = arith.addf %9, %8 : vector<8x256xf32>
    %11 = vector.extract_strided_slice %0 {offsets = [0, 1], sizes = [8, 1], strides = [1, 1]} : vector<8x3xf32> to vector<8x1xf32>
    %12 = vector.extract_strided_slice %2 {offsets = [1, 0], sizes = [1, 256], strides = [1, 1]} : vector<4x256xf32> to vector<1x256xf32>
    %13 = vector.broadcast %11 : vector<8x1xf32> to vector<8x256xf32>
    %14 = vector.broadcast %12 : vector<1x256xf32> to vector<8x256xf32>
    %15 = arith.mulf %13, %14 : vector<8x256xf32>
    %16 = arith.addf %10, %15 : vector<8x256xf32>
    %17 = vector.extract_strided_slice %0 {offsets = [0, 2], sizes = [8, 1], strides = [1, 1]} : vector<8x3xf32> to vector<8x1xf32>
    %18 = vector.extract_strided_slice %2 {offsets = [2, 0], sizes = [1, 256], strides = [1, 1]} : vector<4x256xf32> to vector<1x256xf32>
    %19 = vector.broadcast %17 : vector<8x1xf32> to vector<8x256xf32>
    %20 = vector.broadcast %18 : vector<1x256xf32> to vector<8x256xf32>
    %21 = arith.mulf %19, %20 : vector<8x256xf32>
    %22 = arith.addf %16, %21 : vector<8x256xf32>
    %23 = vector.extract_strided_slice %2 {offsets = [3, 0], sizes = [1, 256], strides = [1, 1]} : vector<4x256xf32> to vector<1x256xf32>
    %24 = vector.broadcast %1 : vector<8x1xf32> to vector<8x256xf32>
    %25 = vector.broadcast %23 : vector<1x256xf32> to vector<8x256xf32>
    %26 = arith.mulf %24, %25 : vector<8x256xf32>
    %27 = arith.addf %22, %26 : vector<8x256xf32>
    %cst = arith.constant 0.000000e+00 : f32
    %28 = vector.broadcast %cst : f32 to vector<8x256xf32>
    %29 = arith.maximumf %27, %28 : vector<8x256xf32>
    %30 = arith.truncf %29 : vector<8x256xf32> to vector<8x256xbf16>
    %c0_7 = arith.constant 0 : index
    %c0_8 = arith.constant 0 : index
    %31 = vector.load %arg5[%c0_7, %c0_8] : memref<256x256xbf16, #tpu.memory_space<vmem>>, vector<256x256xbf16>
    %cst_9 = arith.constant dense<0.000000e+00> : vector<8x256xf32>
    %32 = tpu.matmul %30, %31, %cst_9 {dimension_numbers = #tpu.dot_dimension_numbers<[1], [0], [0], [1], [0, 0, 1, 1], [], []>} : vector<8x256xbf16>, vector<256x256xbf16>, vector<8x256xf32> -> vector<8x256xf32>
    %c0_10 = arith.constant 0 : index
    %c0_11 = arith.constant 0 : index
    %33 = vector.load %arg6[%c0_10, %c0_11] : memref<1x256xf32, #tpu.memory_space<vmem>>, vector<1x256xf32>
    %34 = vector.broadcast %33 : vector<1x256xf32> to vector<8x256xf32>
    %35 = arith.addf %32, %34 : vector<8x256xf32>
    %cst_12 = arith.constant 0.000000e+00 : f32
    %36 = vector.broadcast %cst_12 : f32 to vector<8x256xf32>
    %37 = arith.maximumf %35, %36 : vector<8x256xf32>
    %38 = arith.truncf %37 : vector<8x256xf32> to vector<8x256xbf16>
    %c0_13 = arith.constant 0 : index
    %c0_14 = arith.constant 0 : index
    %39 = vector.load %arg7[%c0_13, %c0_14] : memref<256x8xbf16, #tpu.memory_space<vmem>>, vector<256x8xbf16>
    %cst_15 = arith.constant dense<0.000000e+00> : vector<8x8xf32>
    %40 = tpu.matmul %38, %39, %cst_15 {dimension_numbers = #tpu.dot_dimension_numbers<[1], [0], [0], [1], [0, 0, 1, 1], [], []>} : vector<8x256xbf16>, vector<256x8xbf16>, vector<8x8xf32> -> vector<8x8xf32>
    %c0_16 = arith.constant 0 : index
    %c0_17 = arith.constant 0 : index
    %41 = vector.load %arg8[%c0_16, %c0_17] : memref<1x8xf32, #tpu.memory_space<vmem>>, vector<1x8xf32>
    %42 = vector.broadcast %41 : vector<1x8xf32> to vector<8x8xf32>
    %43 = arith.addf %40, %42 : vector<8x8xf32>
    %c0_18 = arith.constant 0 : index
    %c0_19 = arith.constant 0 : index
    %44 = vector.load %arg9[%c0_18, %c0_19] : memref<8x8xf32, #tpu.memory_space<vmem>>, vector<8x8xf32>
    tpu.vector_store %arg9[%c0_18, %c0_19], %43 {strides = array<i32>} : memref<8x8xf32, #tpu.memory_space<vmem>>, vector<8x8xf32>,
    return
  }
  func.func @transform_0(%arg0: i32) -> (i32, i32) {
    %c0_i32 = arith.constant 0 : i32
    %c0_i32_0 = arith.constant 0 : i32
    return %arg0, %c0_i32 : i32, i32
  }
  func.func @transform_1(%arg0: i32) -> (i32, i32) {
    %c0_i32 = arith.constant 0 : i32
    %c0_i32_0 = arith.constant 0 : i32
    return %arg0, %c0_i32 : i32, i32
  }
  func.func @transform_2(%arg0: i32) -> (i32, i32) {
    %c0_i32 = arith.constant 0 : i32
    %c0_i32_0 = arith.constant 0 : i32
    %c0_i32_1 = arith.constant 0 : i32
    return %c0_i32, %c0_i32_0 : i32, i32
  }
  func.func @transform_3(%arg0: i32) -> (i32, i32) {
    %c0_i32 = arith.constant 0 : i32
    %c0_i32_0 = arith.constant 0 : i32
    %c0_i32_1 = arith.constant 0 : i32
    return %c0_i32, %c0_i32_0 : i32, i32
  }
  func.func @transform_4(%arg0: i32) -> (i32, i32) {
    %c0_i32 = arith.constant 0 : i32
    %c0_i32_0 = arith.constant 0 : i32
    %c0_i32_1 = arith.constant 0 : i32
    return %c0_i32, %c0_i32_0 : i32, i32
  }
  func.func @transform_5(%arg0: i32) -> (i32, i32) {
    %c0_i32 = arith.constant 0 : i32
    %c0_i32_0 = arith.constant 0 : i32
    %c0_i32_1 = arith.constant 0 : i32
    return %c0_i32, %c0_i32_0 : i32, i32
  }
  func.func @transform_6(%arg0: i32) -> (i32, i32) {
    %c0_i32 = arith.constant 0 : i32
    %c0_i32_0 = arith.constant 0 : i32
    %c0_i32_1 = arith.constant 0 : i32
    return %c0_i32, %c0_i32_0 : i32, i32
  }
  func.func @transform_7(%arg0: i32) -> (i32, i32) {
    %c0_i32 = arith.constant 0 : i32
    %c0_i32_0 = arith.constant 0 : i32
    %c0_i32_1 = arith.constant 0 : i32
    return %c0_i32, %c0_i32_0 : i32, i32
  }
  func.func @transform_8(%arg0: i32) -> (i32, i32) {
    %c0_i32 = arith.constant 0 : i32
    %c0_i32_0 = arith.constant 0 : i32
    return %arg0, %c0_i32 : i32, i32
  }
}

</mosaic_0001>

<bundles_post_ra>
// kernel: tpu_custom_call.1
= control target key start
LH: loop header
LB: loop body
LE: loop exit
PB: predicated region body
PF: predicated region fallthrough
CT: control target
= control target key end

     0   :  { %13 = vsyncpa [#allocation3], 0  ;;  %s978_s0 = inlined_call_operand.vmem [shape: f32[8,3], index: 0, kind: input, shape index: {}]   ;;  %s979_s1 = inlined_call_operand.vmem [shape: f32[8,1], index: 1, kind: input, shape index: {}]   ;;  %s980_s2 = inlined_call_operand.vmem [shape: f32[4,256], index: 2, kind: input, shape index: {}]   ;;  %s981_s3 = inlined_call_operand.vmem [shape: f32[1,256], index: 3, kind: input, shape index: {}]   ;;  %s982_s4 = inlined_call_operand.hbm [shape: bf16[256,256], index: 4, kind: input, shape index: {}]   ;;  %s983_s5 = inlined_call_operand.vmem [shape: f32[1,256], index: 5, kind: input, shape index: {}]   ;;  %s984_s6 = inlined_call_operand.vmem [shape: bf16[256,8], index: 6, kind: input, shape index: {}]   ;;  %s985_s7 = inlined_call_operand.vmem [shape: f32[1,8], index: 7, kind: input, shape index: {}]   ;;  %s986_s8 = inlined_call_operand.hbm [shape: f32[8,8], index: 8, kind: output, shape index: {}]  }
   0x1   :  { %14 = vsyncpa [#allocation4], 0  ;;  %s27_s29 = sshll.u32 %s982_s4, 4  ;;  %s854_s30 = smov [#allocation2]   ;;  %s28_s29 = int_to_ptr.hbm [resolvable:$true] %s27_s29 }
   0x2   :  { %s29_s9 = sshll.u32 %s854_s30, 4  ;;  %s855_s10 = smov 128   ;;  %s30_s9 = int_to_ptr.vmem [resolvable:$true] %s29_s9 }
   0x3   :  { %s856_s11 = smov 8  }
   0x4   :  { %35 = dma.hbm_to_vmem [thread:$0]  %s28_s29, 4096, %s30_s9, [#allocation3], %s855_s10, %s855_s10, %s856_s11  }
   0x5   :  { %850 = dma.done.wait [#allocation3], 4096  }
   0x6   :  { %851 = vsyncadd [#allocation3], 4294963200  ;;  %v857_v0 = vmov 0   ;;  %v858_v1 = vmov 2   ;;  %v46_v2 = vld [vmem:[%s978_s0] sm:$0xff]  ;;  %v859_v38 = vmov 1  }
   0x7   :  { %796 = vset.pattern.permute.xlu0 %v857_v0  ;;  %798 = vset.pattern.permute.xlu1 %v858_v1  ;;  %v607_v3 = vld [vmem:[#allocation2 + $0x70] sm:$0xf]  ;;  %v756_v4 = vld [vmem:[#allocation2 + $0x74] sm:$0xf0]  ;;  %v755_v9 = vld [vmem:[#allocation2 + $0x74] sm:$0xf] }
   0x8   :  { %52 = vperm.xlu0 %796, %v46_v2   ;;  %86 = vperm.xlu1 %798, %v46_v2   ;;  %v671_v5 = vld [vmem:[#allocation2 + $0xf0] sm:$0xf]  ;;  %v772_v6 = vld [vmem:[#allocation2 + $0xf4] sm:$0xf0]  ;;  %v608_v7 = vor.u32 %v756_v4, %v607_v3  ;;  %v609_v10 = vld [vmem:[#allocation2 + $0x78] sm:$0xf0] }
   0x9   :  { %v672_v8 = vor.u32 %v772_v6, %v671_v5  ;;  %v771_v11 = vld [vmem:[#allocation2 + $0xf4] sm:$0xf]  ;;  %v612_v12 = vor.u32 %v755_v9, %v609_v10  ;;  %v673_v13 = vld [vmem:[#allocation2 + $0xf8] sm:$0xf0]  ;;  %v599_v14 = vld [vmem:[#allocation2 + $0x60] sm:$0xf] }
   0xa   :  { %v754_v15 = vld [vmem:[#allocation2 + $0x64] sm:$0xf0]  ;;  %316 = vmatpush.bf16.msra.mxu0 %v608_v7  ;;  %v676_v16 = vor.u32 %v771_v11, %v673_v13  ;;  %v663_v18 = vld [vmem:[#allocation2 + $0xe0] sm:$0xf]  ;;  %v753_v20 = vld [vmem:[#allocation2 + $0x64] sm:$0xf] }
   0xb   :  { %329 = vmatpush.bf16.msra.mxu1 %v672_v8  ;;  %v600_v17 = vor.u32 %v754_v15, %v599_v14  ;;  %v770_v19 = vld [vmem:[#allocation2 + $0xe4] sm:$0xf0]  ;;  %342 = vmatpush.bf16.msra.mxu2 %v612_v12  ;;  %v601_v22 = vld [vmem:[#allocation2 + $0x68] sm:$0xf0]  ;;  %v769_v23 = vld [vmem:[#allocation2 + $0xe4] sm:$0xf] }
   0xc   :  { %v664_v21 = vor.u32 %v770_v19, %v663_v18  ;;  %v665_v24 = vld [vmem:[#allocation2 + $0xe8] sm:$0xf0]  ;;  %355 = vmatpush.bf16.msra.mxu3 %v676_v16  ;;  %v591_v25 = vld [vmem:[#allocation2 + $0x50] sm:$0xf]  ;;  %v752_v26 = vld [vmem:[#allocation2 + $0x54] sm:$0xf0]  ;;  %v604_v29 = vor.u32 %v753_v20, %v601_v22 }
   0xd   :  { %v655_v27 = vld [vmem:[#allocation2 + $0xd0] sm:$0xf]  ;;  %v47_v28 = vld [vmem:[%s979_s1] sm:$0xff]  ;;  %v668_v30 = vor.u32 %v769_v23, %v665_v24  ;;  %v768_v31 = vld [vmem:[#allocation2 + $0xd4] sm:$0xf0]  ;;  %v592_v33 = vor.u32 %v752_v26, %v591_v25  ;;  %s860_s24 = smov [#allocation5]  }
   0xe   :  { %v751_v32 = vld [vmem:[#allocation2 + $0x54] sm:$0xf]  ;;  %317 = vmatpush.bf16.msra.mxu0 %v600_v17  ;;  %v656_v34 = vor.u32 %v768_v31, %v655_v27  ;;  %v593_v35 = vld [vmem:[#allocation2 + $0x58] sm:$0xf0]  ;;  %v583_v41 = vld [vmem:[#allocation2 + $0x40] sm:$0xf] }
   0xf   :  { %330 = vmatpush.bf16.msra.mxu1 %v664_v21  ;;  %v767_v36 = vld [vmem:[#allocation2 + $0xd4] sm:$0xf]  ;;  %v657_v37 = vld [vmem:[#allocation2 + $0xd8] sm:$0xf0]  ;;  %343 = vmatpush.bf16.msra.mxu2 %v604_v29  ;;  %v596_v39 = vor.u32 %v751_v32, %v593_v35  ;;  %v750_v42 = vld [vmem:[#allocation2 + $0x44] sm:$0xf0] }
  0x10   :  { %797 = vset.pattern.permute.xlu0 %v859_v38  ;;  %799 = vset.pattern.permute.xlu1 %v857_v0  ;;  %v660_v40 = vor.u32 %v767_v36, %v657_v37  ;;  %v647_v43 = vld [vmem:[#allocation2 + $0xc0] sm:$0xf]  ;;  %v584_v44 = vor.u32 %v750_v42, %v583_v41  ;;  %v766_v45 = vld [vmem:[#allocation2 + $0xc4] sm:$0xf0]  ;;  %v749_v46 = vld [vmem:[#allocation2 + $0x44] sm:$0xf] }
  0x11   :  { %72 = vperm.xlu0 %797, %v46_v2   ;;  %101 = vperm.xlu1 %799, %v47_v28   ;;  %v585_v47 = vld [vmem:[#allocation2 + $0x48] sm:$0xf0]  ;;  %v648_v48 = vor.u32 %v766_v45, %v647_v43  ;;  %v765_v50 = vld [vmem:[#allocation2 + $0xc4] sm:$0xf]  ;;  %v575_v53 = vld [vmem:[#allocation2 + $0x30] sm:$0xf] }
  0x12   :  { %356 = vmatpush.bf16.msra.mxu3 %v668_v30  ;;  %318 = vmatpush.bf16.msra.mxu0 %v592_v33  ;;  %v588_v49 = vor.u32 %v749_v46, %v585_v47  ;;  %v649_v51 = vld [vmem:[#allocation2 + $0xc8] sm:$0xf0]  ;;  %v748_v54 = vld [vmem:[#allocation2 + $0x34] sm:$0xf0]  ;;  %v639_v55 = vld [vmem:[#allocation2 + $0xb0] sm:$0xf] }
  0x13   :  { %331 = vmatpush.bf16.msra.mxu1 %v656_v34  ;;  %344 = vmatpush.bf16.msra.mxu2 %v596_v39  ;;  %v652_v52 = vor.u32 %v765_v50, %v649_v51  ;;  %v576_v56 = vor.u32 %v748_v54, %v575_v53  ;;  %v764_v57 = vld [vmem:[#allocation2 + $0xb4] sm:$0xf0]  ;;  %v747_v58 = vld [vmem:[#allocation2 + $0x34] sm:$0xf]  ;;  %v577_v60 = vld [vmem:[#allocation2 + $0x38] sm:$0xf0] }
  0x14   :  { %v640_v59 = vor.u32 %v764_v57, %v639_v55  ;;  %v763_v61 = vld [vmem:[#allocation2 + $0xb4] sm:$0xf]  ;;  %v641_v62 = vld [vmem:[#allocation2 + $0xb8] sm:$0xf0]  ;;  %v580_v63 = vor.u32 %v747_v58, %v577_v60  ;;  %v567_v1 = vld [vmem:[#allocation2 + $0x20] sm:$0xf] }
  0x15   :  { %v746_v2 = vld [vmem:[#allocation2 + $0x24] sm:$0xf0]  ;;  %v631_v4 = vld [vmem:[#allocation2 + $0xa0] sm:$0xf]  ;;  %v745_v6 = vld [vmem:[#allocation2 + $0x24] sm:$0xf] }
  0x16   :  { %357 = vmatpush.bf16.msra.mxu3 %v660_v40  ;;  %319 = vmatpush.bf16.msra.mxu0 %v584_v44  ;;  %v568_v3 = vor.u32 %v746_v2, %v567_v1  ;;  %v762_v5 = vld [vmem:[#allocation2 + $0xa4] sm:$0xf0]  ;;  %v569_v8 = vld [vmem:[#allocation2 + $0x28] sm:$0xf0]  ;;  %v761_v9 = vld [vmem:[#allocation2 + $0xa4] sm:$0xf] }
  0x17   :  { %332 = vmatpush.bf16.msra.mxu1 %v648_v48  ;;  %345 = vmatpush.bf16.msra.mxu2 %v588_v49  ;;  %v632_v7 = vor.u32 %v762_v5, %v631_v4  ;;  %v633_v10 = vld [vmem:[#allocation2 + $0xa8] sm:$0xf0]  ;;  %v572_v11 = vor.u32 %v745_v6, %v569_v8  ;;  %v559_v13 = vld [vmem:[#allocation2 + $0x10] sm:$0xf]  ;;  %v744_v14 = vld [vmem:[#allocation2 + $0x14] sm:$0xf0] }
  0x18   :  { %v636_v12 = vor.u32 %v761_v9, %v633_v10  ;;  %v623_v15 = vld [vmem:[#allocation2 + $0x90] sm:$0xf]  ;;  %v560_v16 = vor.u32 %v744_v14, %v559_v13  ;;  %v760_v17 = vld [vmem:[#allocation2 + $0x94] sm:$0xf0]  ;;  %v743_v18 = vld [vmem:[#allocation2 + $0x14] sm:$0xf] }
  0x19   :  { %800 = vset.pattern.permute.xlu0 %v857_v0  ;;  %v644_v0 = vor.u32 %v763_v61, %v641_v62  ;;  %v624_v19 = vor.u32 %v760_v17, %v623_v15  ;;  %v561_v20 = vld [vmem:[#allocation2 + $0x18] sm:$0xf0]  ;;  %v759_v21 = vld [vmem:[#allocation2 + $0x94] sm:$0xf]  ;;  %v551_v25 = vld [vmem:[#allocation2] sm:$0xf] }
  0x1a   :  { %358 = vmatpush.bf16.msra.mxu3 %v652_v52  ;;  %320 = vmatpush.bf16.msra.mxu0 %v576_v56  ;;  %v625_v22 = vld [vmem:[#allocation2 + $0x98] sm:$0xf0]  ;;  %v564_v23 = vor.u32 %v743_v18, %v561_v20  ;;  %v742_v26 = vld [vmem:[#allocation2 + $0x4] sm:$0xf0]  ;;  %v615_v27 = vld [vmem:[#allocation2 + $0x80] sm:$0xf] }
  0x1b   :  { %333 = vmatpush.bf16.msra.mxu1 %v640_v59  ;;  %346 = vmatpush.bf16.msra.mxu2 %v580_v63  ;;  %v628_v24 = vor.u32 %v759_v21, %v625_v22  ;;  %v552_v28 = vor.u32 %v742_v26, %v551_v25  ;;  %v758_v29 = vld [vmem:[#allocation2 + $0x84] sm:$0xf0]  ;;  %v741_v30 = vld [vmem:[#allocation2 + $0x4] sm:$0xf]  ;;  %v553_v31 = vld [vmem:[#allocation2 + $0x8] sm:$0xf0] }
  0x1c   :  { %v616_v32 = vor.u32 %v758_v29, %v615_v27  ;;  %v556_v33 = vor.u32 %v741_v30, %v553_v31  ;;  %v757_v34 = vld [vmem:[#allocation2 + $0x84] sm:$0xf]  ;;  %v617_v35 = vld [vmem:[#allocation2 + $0x88] sm:$0xf0]  ;;  %v780_v37 = vld [vmem:[%s984_s6 + $0x38] sm:$0xff]  ;;  %s537_s25 = sshll.u32 %s860_s24, 4  ;;  %s538_s25 = int_to_ptr.vmem [resolvable:$true] %s537_s25 }
  0x1d   :  { %v620_v36 = vor.u32 %v757_v34, %v617_v35  ;;  %v788_v38 = vld [vmem:[%s984_s6 + $0x78] sm:$0xff]  ;;  %v779_v39 = vld [vmem:[%s984_s6 + $0x30] sm:$0xff]  ;;  %v48_v41 = vld [vmem:[%s980_s2] sm:$0xff]  ;;  %s539_s28 = sshll.u32 %s986_s8, 4  ;;  %vm530_vm0 = vcmask 64512   ;;  %s540_s28 = int_to_ptr.hbm [resolvable:$true] %s539_s28 }
  0x1e   :  { %359 = vmatpush.bf16.msra.mxu3 %v644_v0  ;;  %321 = vmatpush.bf16.msra.mxu0 %v568_v3  ;;  %v787_v40 = vld [vmem:[%s984_s6 + $0x70] sm:$0xff]  ;;  %v778_v42 = vld [vmem:[%s984_s6 + $0x28] sm:$0xff]  ;;  %v56_v43 = vperm.slane %v48_v41, 0  ;;  %v57_v44 = vperm.slane %v48_v41, 4  ;;  %v49_v48 = vld [vmem:[%s981_s3] sm:$0x3] }
  0x1f   :  { %334 = vmatpush.bf16.msra.mxu1 %v632_v7  ;;  %347 = vmatpush.bf16.msra.mxu2 %v572_v11  ;;  %v786_v45 = vld [vmem:[%s984_s6 + $0x68] sm:$0xff]  ;;  %v777_v49 = vld [vmem:[%s984_s6 + $0x20] sm:$0xff]  ;;  %v75_v52 = vperm.slane %v48_v41, 1  ;;  %v76_v53 = vperm.slane %v48_v41, 5  ;;  %v89_v55 = vperm.slane %v48_v41, 2  ;;  %v90_v56 = vperm.slane %v48_v41, 6 }
  0x20   :  { %v60_v50 = vperm.slane %v56_v43, 0  ;;  %v61_v51 = vperm.slane %v57_v44, 0  ;;  %v785_v54 = vld [vmem:[%s984_s6 + $0x60] sm:$0xff]  ;;  %v104_v57 = vperm.slane %v48_v41, 3  ;;  %v105_v58 = vperm.slane %v48_v41, 7  ;;  %v776_v61 = vld [vmem:[%s984_s6 + $0x18] sm:$0xff] }
  0x21   :  { %v65_v59 = vperm.slane %v49_v48, 0  ;;  %v66_v60 = vperm.slane %v49_v48, 1  ;;  %v79_v0 = vperm.slane %v75_v52, 1  ;;  %v80_v1 = vperm.slane %v76_v53, 1  ;;  %v775_v8 = vld [vmem:[%s984_s6 + $0x10] sm:$0xff]  ;;  %v784_v27 = vld [vmem:[%s984_s6 + $0x58] sm:$0xff] }
  0x22   :  { %360 = vmatpush.bf16.msra.mxu3 %v636_v12  ;;  %322 = vmatpush.bf16.msra.mxu0 %v560_v16  ;;  %v93_v2 = vperm.slane %v89_v55, 2  ;;  %v94_v3 = vperm.slane %v90_v56, 2  ;;  %v108_v4 = vperm.slane %v104_v57, 3  ;;  %v109_v5 = vperm.slane %v105_v58, 3  ;;  %v783_v29 = vld [vmem:[%s984_s6 + $0x50] sm:$0xff]  ;;  %v773_v30 = vld [vmem:[%s984_s6] sm:$0xff] }
  0x23   :  { %335 = vmatpush.bf16.msra.mxu1 %v624_v19  ;;  %348 = vmatpush.bf16.msra.mxu2 %v564_v23  ;;  %v782_v31 = vld [vmem:[%s984_s6 + $0x48] sm:$0xff]  ;;  %v801_v53 = vld [vmem:[%s985_s7] ss:$0 sm:$0xff] }
  0x26   :  { %361 = vmatpush.bf16.msra.mxu3 %v628_v24  ;;  %323 = vmatpush.bf16.msra.mxu0 %v552_v28  ;;  %v774_v28 = vld [vmem:[%s984_s6 + $0x8] sm:$0xff] }
  0x27   :  { %336 = vmatpush.bf16.msra.mxu1 %v616_v32  ;;  %349 = vmatpush.bf16.msra.mxu2 %v556_v33  ;;  %v781_v32 = vld [vmem:[%s984_s6 + $0x40] sm:$0xff] }
  0x28   :  { %v150_v33 = vld [vmem:[%s983_s5] sm:$0x3] }
  0x29   :  { %v152_v34 = vperm.slane %v150_v33, 0 }
  0x2a   :  { %362 = vmatpush.bf16.msra.mxu3 %v620_v36  ;;  %504 = vmatpush.bf16.msrb.mxu0 %v780_v37 }
  0x2b   :  { %517 = vmatpush.bf16.msrb.mxu1 %v788_v38 }
  0x2e   :  { %505 = vmatpush.bf16.msrb.mxu0 %v779_v39  ;;  %v153_v39 = vperm.slane %v150_v33, 1 }
  0x2f   :  { %518 = vmatpush.bf16.msrb.mxu1 %v787_v40 }
  0x32   :  { %506 = vmatpush.bf16.msrb.mxu0 %v778_v42 }
  0x33   :  { %519 = vmatpush.bf16.msrb.mxu1 %v786_v45 }
  0x36   :  { %507 = vmatpush.bf16.msrb.mxu0 %v777_v49 }
  0x37   :  { %520 = vmatpush.bf16.msrb.mxu1 %v785_v54 }
  0x3a   :  { %508 = vmatpush.bf16.msrb.mxu0 %v776_v61 }
  0x3b   :  { %521 = vmatpush.bf16.msrb.mxu1 %v784_v27 }
  0x3e   :  { %509 = vmatpush.bf16.msrb.mxu0 %v775_v8 }
  0x3f   :  { %522 = vmatpush.bf16.msrb.mxu1 %v783_v29 }
  0x42   :  { %510 = vmatpush.bf16.msrb.mxu0 %v774_v28 }
  0x43   :  { %523 = vmatpush.bf16.msrb.mxu1 %v782_v31 }
  0x46   :  { %511 = vmatpush.bf16.msrb.mxu0 %v773_v30 }
  0x47   :  { %524 = vmatpush.bf16.msrb.mxu1 %v781_v32 }
  0x7a   :  { %v53_v46 = vpop.permute.xlu0 %52  ;;  %v87_v47 = vpop.permute.xlu1 %86 }
  0x7b   :  { %v62_v62 = vmul.f32 %v60_v50, %v53_v46  ;;  %v63_v63 = vmul.f32 %v61_v51, %v53_v46  ;;  %v95_v13 = vmul.f32 %v93_v2, %v87_v47  ;;  %v96_v14 = vmul.f32 %v94_v3, %v87_v47 }
  0x7d   :  { %v69_v9 = vadd.f32 %v65_v59, %v62_v62  ;;  %v70_v10 = vadd.f32 %v66_v60, %v63_v63 }
  0x83   :  { %v73_v6 = vpop.permute.xlu0 %72  ;;  %v102_v7 = vpop.permute.xlu1 %101 }
  0x84   :  { %v81_v11 = vmul.f32 %v79_v0, %v73_v6  ;;  %v82_v12 = vmul.f32 %v80_v1, %v73_v6  ;;  %v110_v17 = vmul.f32 %v108_v4, %v102_v7  ;;  %v111_v18 = vmul.f32 %v109_v5, %v102_v7 }
  0x86   :  { %v83_v15 = vadd.f32 %v81_v11, %v69_v9  ;;  %v84_v16 = vadd.f32 %v82_v12, %v70_v10 }
  0x88   :  { %v97_v19 = vadd.f32 %v95_v13, %v83_v15  ;;  %v98_v20 = vadd.f32 %v96_v14, %v84_v16 }
  0x8a   :  { %v112_v21 = vadd.f32 %v110_v17, %v97_v19  ;;  %v113_v22 = vadd.f32 %v111_v18, %v98_v20 }
  0x8c   :  { %v114_v23 = vmax.f32 %v112_v21, 0.0  ;;  %v115_v24 = vmax.f32 %v113_v22, 0.0 }
  0x8e   :  { %v116_v25 = vpack.c.bf16 %v114_v23, %v114_v23  ;;  %v117_v26 = vpack.c.bf16 %v115_v24, %v115_v24 }
  0x90   :  { %324 = vmatmul.bf16.vlgmr.msra.gmra.mxu0 %v116_v25  ;;  %337 = vmatmul.bf16.vlgmr.msra.gmra.mxu1 %v117_v26 }
  0x91   :  { %350 = vmatmul.bf16.vlgmr.msra.gmra.mxu2 %v116_v25  ;;  %363 = vmatmul.bf16.vlgmr.msra.gmra.mxu3 %v117_v26 }
 0x10d   :  { %v325_v35 = vpop.f32.mrf.mxu0  ;;  %v338_v36 = vpop.f32.mrf.mxu1 }
 0x10e   :  { %v326_v37 = vadd.f32 %v325_v35, %v152_v34 }
 0x110   :  { %v339_v38 = vadd.f32 %v338_v36, %v326_v37 }
 0x112   :  { %v368_v40 = vmax.f32 %v339_v38, 0.0 }
 0x114   :  { %v370_v41 = vpack.c.bf16 %v368_v40, %v368_v40  ;;  %v351_v42 = vpop.f32.mrf.mxu2  ;;  %v364_v43 = vpop.f32.mrf.mxu3 }
 0x115   :  { %v352_v44 = vadd.f32 %v351_v42, %v153_v39  ;;  %v327_v45 = vpop.f32.mrf.mxu0  ;;  %v340_v46 = vpop.f32.mrf.mxu1 }
 0x116   :  { %512 = vmatmul.bf16.vlgmr.msrb.gmra.mxu0 %v370_v41 }
 0x117   :  { %v365_v47 = vadd.f32 %v364_v43, %v352_v44 }
 0x119   :  { %v369_v48 = vmax.f32 %v365_v47, 0.0 }
 0x11b   :  { %v371_v49 = vpack.c.bf16 %v369_v48, %v369_v48 }
 0x11c   :  { %v353_v50 = vpop.f32.mrf.mxu2  ;;  %v366_v51 = vpop.f32.mrf.mxu3 }
 0x11d   :  { %525 = vmatmul.bf16.vlgmr.msrb.gmra.mxu1 %v371_v49 }
 0x193   :  { %v513_v52 = vpop.f32.mrf.mxu0 }
 0x194   :  { %v514_v54 = vadd.f32 %v801_v53, %v513_v52 }
 0x19a   :  { %v526_v55 = vpop.f32.mrf.mxu1 }
 0x19b   :  { %v527_v56 = vadd.f32 %v526_v55, %v514_v54  ;;  %v515_v57 = vpop.f32.mrf.mxu0 }
 0x19d   :  { %531 = vst.msk [vmem:[#allocation5] sm:$0xff] %vm530_vm0, %v527_v56 }
 0x19e   :  { %542 = dma.vmem_to_hbm [thread:$0]  %s538_s25, 128, %s540_s28, [#allocation4]  }
 0x1a2   :  { %v528_v58 = vpop.f32.mrf.mxu1 }
 0x1a3   :  { %852 = dma.done.wait [#allocation4], 128  }
 0x1a4   :  { %853 = vsyncadd [#allocation4], 4294967168 }
 0x1a5   :  { %547 = vsyncpa [#allocation3], 1 }
 0x1a6   :  { %548 = vsyncpa [#allocation4], 1 }

</bundles_post_ra>
